<compile_context>
chip_gen: v7x
topology: tpu7x:2x2x1
jax: 0.10.0
libtpu: 0.0.40
codegen_flags: <defaults>
</compile_context>

<pallas_src>
from functools import partial

import numpy as np

import jax
import jax.numpy as jnp
from jax.experimental import pallas as pl
from jax.experimental.pallas import tpu as pltpu

NUM_LEVELS = 3


# ----------------------------------------------------------------------------
# Synthetic RTMDet-like model parameters (identical to the previous version)
# ----------------------------------------------------------------------------
def init_params(in_ch=4, hidden=32, num_classes=8, num_levels=3):
    key = jax.random.PRNGKey(0)

    def nrm(k, shape, scale):
        return scale * jax.random.normal(k, shape, jnp.float32)

    keys = jax.random.split(key, 2 + 2 * (num_levels - 1) + 4 * num_levels)
    ki = iter(keys)
    p = {
        "stem_w": nrm(next(ki), (in_ch, hidden), 0.1),
        "stem_b": nrm(next(ki), (hidden,), 0.01),
        "down": [],
        "cls": [],
        "reg": [],
    }
    for _ in range(num_levels - 1):
        p["down"].append((nrm(next(ki), (hidden, hidden), 0.1),
                          nrm(next(ki), (hidden,), 0.01)))
    for _ in range(num_levels):
        p["cls"].append((nrm(next(ki), (hidden, num_classes), 0.1),
                         nrm(next(ki), (num_classes,), 0.01)))
        p["reg"].append((nrm(next(ki), (hidden, 4), 0.1),
                         nrm(next(ki), (4,), 0.01)))
    return p


# ----------------------------------------------------------------------------
# One-time parameter packing: everything into a single sublane-padded f32 slab.
# Layout (channels-first): each block occupies ceil(Cout/8)*8 rows; weight W^T
# (Cout, Cin) sits in lanes [0:Cin], bias in lane `hidden`.
# ----------------------------------------------------------------------------
def prepare_params(params, num_levels=NUM_LEVELS):
    stem_w = np.asarray(params["stem_w"], np.float32)           # (Cin, hidden)
    stem_b = np.asarray(params["stem_b"], np.float32)
    in_ch, hidden = stem_w.shape
    nc = np.asarray(params["cls"][0][0]).shape[1]

    blocks = [(stem_w.T, stem_b)]                               # (Cout, Cin), (Cout,)
    for (w, b) in params["down"]:
        blocks.append((np.asarray(w, np.float32).T, np.asarray(b, np.float32)))
    for lvl in range(num_levels):                               # fused cls|reg heads
        cw, cb = params["cls"][lvl]
        rw, rb = params["reg"][lvl]
        hw = np.concatenate([np.asarray(cw, np.float32),
                             np.asarray(rw, np.float32)], axis=1).T   # (nc+4, hidden)
        hb = np.concatenate([np.asarray(cb, np.float32),
                             np.asarray(rb, np.float32)])             # (nc+4,)
        blocks.append((hw, hb))

    lanes = hidden + 1                      # bias lives in lane index `hidden`
    offs, allocs, cins = [], [], []
    total = 0
    for (w, _) in blocks:
        offs.append(total)
        ra = ((w.shape[0] + 7) // 8) * 8    # sublane-pad each block
        allocs.append(ra)
        cins.append(w.shape[1])
        total += ra

    slab = np.zeros((total, lanes), np.float32)
    for (w, b), off in zip(blocks, offs):
        cout = w.shape[0]
        slab[off:off + cout, :w.shape[1]] = w
        slab[off:off + cout, hidden] = b

    meta = dict(hidden=int(hidden), in_ch=int(in_ch), nc=int(nc),
                row_off=tuple(offs), row_alloc=tuple(allocs), cin=tuple(cins),
                num_levels=int(num_levels))
    return jnp.asarray(slab), meta


# ----------------------------------------------------------------------------
# Fused Pallas kernel factory: stem + 2 downsamples + 3 (cls|reg) heads.
# All features channels-first 2-D: (C, N*H*W) with batch folded into lanes.
# ----------------------------------------------------------------------------
def _idiv(x, d):  # d is a Python int
    return jnp.right_shift(x, d.bit_length() - 1) if (d & (d - 1)) == 0 else x // d


def _imod(x, d):
    return jnp.bitwise_and(x, d - 1) if (d & (d - 1)) == 0 else x % d


def _make_kernel(meta, N, H, W):
    hid = meta["hidden"]
    nc = meta["nc"]
    offs, allocs, cins = meta["row_off"], meta["row_alloc"], meta["cin"]

    HW0 = H * W
    H1, W1 = H // 2, W // 2
    HW1 = H1 * W1
    H2, W2 = H1 // 2, W1 // 2
    HW2 = H2 * W2

    def sel_matrix(hw_in, w_in, hw_out, w_out):
        # Batched (block-diagonal) 0/1 selection matrix so  F @ S == F[:, ::2, ::2]
        # per batch block, generated on the VPU from iota comparisons (no DMA).
        rows = jax.lax.broadcasted_iota(jnp.int32, (N * hw_in, N * hw_out), 0)
        cols = jax.lax.broadcasted_iota(jnp.int32, (N * hw_in, N * hw_out), 1)
        nb = _idiv(cols, hw_out)          # batch block of the output column
        cb = _imod(cols, hw_out)          # spatial index within the block
        src = nb * hw_in + _idiv(cb, w_out) * (2 * w_in) + _imod(cb, w_out) * 2
        return jnp.where(rows == src, jnp.float32(1.0), jnp.float32(0.0))

    def kernel(x_ref, slab_ref,
               c0_ref, c1_ref, c2_ref, r0_ref, r1_ref, r2_ref):
        slab = slab_ref[...]

        def wb(idx):
            off, ra, cin = offs[idx], allocs[idx], cins[idx]
            blk = slab[off:off + ra]                 # static, sublane-aligned view
            return blk[:, :cin], blk[:, hid:hid + 1]

        def conv(idx, feat, relu):
            w, b = wb(idx)
            y = jnp.dot(w, feat, preferred_element_type=jnp.float32) + b
            return jnp.maximum(y, 0.0) if relu else y

        # Fold the batch into the lane axis: (Cin, N*HW0)
        if N == 1:
            x_cat = x_ref[0]
        else:
            x_cat = jnp.concatenate([x_ref[n] for n in range(N)], axis=-1)

        sel1 = sel_matrix(HW0, W, HW1, W1)           # (N*HW0, N*HW1)
        sel2 = sel_matrix(HW1, W1, HW2, W2)          # (N*HW1, N*HW2)

        f0 = conv(0, x_cat, True)                                        # (hid, N*HW0)
        f0_ds = jnp.dot(f0, sel1, preferred_element_type=jnp.float32)
        f1 = conv(1, f0_ds, True)                                        # (hid, N*HW1)
        f1_ds = jnp.dot(f1, sel2, preferred_element_type=jnp.float32)
        f2 = conv(2, f1_ds, True)                                        # (hid, N*HW2)

        def heads(idx, feat, hw_l, c_ref, r_ref):
            y = conv(idx, feat, False)               # (>=nc+4 rows, N*hw_l)
            for n in range(N):                       # tiny static batch
                c_ref[n] = y[:nc, n * hw_l:(n + 1) * hw_l].astype(c_ref.dtype)
                r_ref[n] = y[nc:nc + 4, n * hw_l:(n + 1) * hw_l].astype(r_ref.dtype)

        heads(3, f0, HW0, c0_ref, r0_ref)
        heads(4, f1, HW1, c1_ref, r1_ref)
        heads(5, f2, HW2, c2_ref, r2_ref)

    return kernel


# ----------------------------------------------------------------------------
# Wrapper: one fused pallas_call, 2 inputs (x, packed params), 6 outputs.
# Only free reshapes outside the kernel.
# ----------------------------------------------------------------------------
def onnx_tracer_forward(slab, x, *, meta):
    N, C, H, W = x.shape
    nc = meta["nc"]
    x3 = x.reshape(N, C, H * W)                      # free (row-major) reshape

    level_hw = [(H, W), (H // 2, W // 2), (H // 4, W // 4)]
    kernel = _make_kernel(meta, N, H, W)
    vmem = pl.BlockSpec(memory_space=pltpu.MemorySpace.VMEM)

    out_shape = tuple(
        [jax.ShapeDtypeStruct((N, nc, hl * wl), jnp.float32) for (hl, wl) in level_hw]
        + [jax.ShapeDtypeStruct((N, 4, hl * wl), jnp.float32) for (hl, wl) in level_hw])

    outs = pl.pallas_call(
        kernel,
        out_shape=out_shape,
        in_specs=[vmem, vmem],
        out_specs=tuple([vmem] * 6),
    )(x3, slab)

    cls_scores = tuple(outs[l].reshape(N, nc, *level_hw[l]) for l in range(NUM_LEVELS))
    bbox_preds = tuple(outs[NUM_LEVELS + l].reshape(N, 4, *level_hw[l])
                       for l in range(NUM_LEVELS))
    # flatten ((cls0, cls1, cls2), (bbox0, bbox1, bbox2)) as the tracer does
    return cls_scores + bbox_preds


# ----------------------------------------------------------------------------
# Pure-jnp (XLA) reference of the same synthetic model, for correctness check.
# ----------------------------------------------------------------------------
def _reference_forward(params, x_nchw):
    x = jnp.transpose(x_nchw, (0, 2, 3, 1))  # NCHW -> NHWC

    def pw(t, w, b, relu):
        y = jnp.einsum("nhwc,cd->nhwd", t, w) + b
        return jnp.maximum(y, 0.0) if relu else y

    f = pw(x, params["stem_w"], params["stem_b"], True)
    feats = [f]
    for (w, b) in params["down"]:
        f = pw(f[:, ::2, ::2, :], w, b, True)
        feats.append(f)
    cls_list, reg_list = [], []
    for lvl, feat in enumerate(feats):
        cw, cb = params["cls"][lvl]
        rw, rb = params["reg"][lvl]
        cls_list.append(jnp.transpose(pw(feat, cw, cb, False), (0, 3, 1, 2)))
        reg_list.append(jnp.transpose(pw(feat, rw, rb, False), (0, 3, 1, 2)))
    return tuple(cls_list) + tuple(reg_list)


# ----------------------------------------------------------------------------
if __name__ == "__main__":
    N, C, H, W = 2, 4, 16, 16
    x = jax.random.normal(jax.random.PRNGKey(0), (N, C, H, W), jnp.float32)
    params = init_params(in_ch=C, hidden=32, num_classes=8, num_levels=NUM_LEVELS)

    # one-time parameter packing (hoisted out of the jitted forward)
    slab, meta = prepare_params(params)
    fwd = jax.jit(partial(onnx_tracer_forward, meta=meta))

    outs = jax.block_until_ready(fwd(slab, x))

    expected_shapes = [
        (N, 8, 16, 16), (N, 8, 8, 8), (N, 8, 4, 4),   # cls scores, 3 levels
        (N, 4, 16, 16), (N, 4, 8, 8), (N, 4, 4, 4),   # bbox preds, 3 levels
    ]
    assert len(outs) == 6
    for o, s in zip(outs, expected_shapes):
        assert o.shape == s, (o.shape, s)
        assert o.dtype == jnp.float32
        assert bool(jnp.all(jnp.isfinite(o)))

    # numerical check against the pure-XLA reference of the same model
    refs = jax.block_until_ready(jax.jit(_reference_forward)(params, x))
    for o, r in zip(outs, refs):
        assert bool(jnp.allclose(o, r, rtol=1e-4, atol=1e-4))

    print("KERNEL_OK")
</pallas_src>

<mosaic_0001>
module attributes {stable_mosaic.version = 11 : i64} {
  func.func @kernel(%arg0: memref<2x4x256xf32, #tpu.memory_space<vmem>>, %arg1: memref<144x33xf32, #tpu.memory_space<vmem>>, %arg2: memref<2x8x256xf32, #tpu.memory_space<vmem>>, %arg3: memref<2x8x64xf32, #tpu.memory_space<vmem>>, %arg4: memref<2x8x16xf32, #tpu.memory_space<vmem>>, %arg5: memref<2x4x256xf32, #tpu.memory_space<vmem>>, %arg6: memref<2x4x64xf32, #tpu.memory_space<vmem>>, %arg7: memref<2x4x16xf32, #tpu.memory_space<vmem>>) attributes {dimension_semantics = [], scalar_prefetch = 0 : i64, scratch_operands = 0 : i64, tpu.core_type = #tpu.core_type<tc>} {
    %c0 = arith.constant 0 : index
    %c0_0 = arith.constant 0 : index
    %0 = vector.load %arg1[%c0, %c0_0] : memref<144x33xf32, #tpu.memory_space<vmem>>, vector<144x33xf32>
    %c0_1 = arith.constant 0 : index
    %c0_2 = arith.constant 0 : index
    %c0_3 = arith.constant 0 : index
    %1 = vector.load %arg0[%c0_1, %c0_2, %c0_3] : memref<2x4x256xf32, #tpu.memory_space<vmem>>, vector<1x4x256xf32>
    %2 = vector.shape_cast %1 : vector<1x4x256xf32> to vector<4x256xf32>
    %c1 = arith.constant 1 : index
    %c0_4 = arith.constant 0 : index
    %c0_5 = arith.constant 0 : index
    %3 = vector.load %arg0[%c1, %c0_4, %c0_5] : memref<2x4x256xf32, #tpu.memory_space<vmem>>, vector<1x4x256xf32>
    %4 = vector.shape_cast %3 : vector<1x4x256xf32> to vector<4x256xf32>
    %5 = tpu.concatenate %2, %4 in 1 : vector<4x256xf32>, vector<4x256xf32> -> vector<4x512xf32>
    %6 = tpu.iota {dimensions = array<i32: 0>} : vector<512x128xi32>
    %7 = tpu.iota {dimensions = array<i32: 1>} : vector<512x128xi32>
    %c6_i32 = arith.constant 6 : i32
    %8 = vector.broadcast %c6_i32 : i32 to vector<512x128xi32>
    %9 = arith.shrsi %7, %8 : vector<512x128xi32>
    %c63_i32 = arith.constant 63 : i32
    %10 = vector.broadcast %c63_i32 : i32 to vector<512x128xi32>
    %11 = arith.andi %7, %10 : vector<512x128xi32>
    %c256_i32 = arith.constant 256 : i32
    %12 = vector.broadcast %c256_i32 : i32 to vector<512x128xi32>
    %13 = arith.muli %9, %12 : vector<512x128xi32>
    %c3_i32 = arith.constant 3 : i32
    %14 = vector.broadcast %c3_i32 : i32 to vector<512x128xi32>
    %15 = arith.shrsi %11, %14 : vector<512x128xi32>
    %c32_i32 = arith.constant 32 : i32
    %16 = vector.broadcast %c32_i32 : i32 to vector<512x128xi32>
    %17 = arith.muli %15, %16 : vector<512x128xi32>
    %18 = arith.addi %13, %17 : vector<512x128xi32>
    %c7_i32 = arith.constant 7 : i32
    %19 = vector.broadcast %c7_i32 : i32 to vector<512x128xi32>
    %20 = arith.andi %11, %19 : vector<512x128xi32>
    %c2_i32 = arith.constant 2 : i32
    %21 = vector.broadcast %c2_i32 : i32 to vector<512x128xi32>
    %22 = arith.muli %20, %21 : vector<512x128xi32>
    %23 = arith.addi %18, %22 : vector<512x128xi32>
    %24 = arith.cmpi eq, %6, %23 : vector<512x128xi32>
    %cst = arith.constant 1.000000e+00 : f32
    %cst_6 = arith.constant 0.000000e+00 : f32
    %25 = vector.broadcast %cst : f32 to vector<512x128xf32>
    %26 = vector.broadcast %cst_6 : f32 to vector<512x128xf32>
    %27 = arith.select %24, %25, %26 : vector<512x128xi1>, vector<512x128xf32>
    %28 = tpu.iota {dimensions = array<i32: 0>} : vector<128x32xi32>
    %29 = tpu.iota {dimensions = array<i32: 1>} : vector<128x32xi32>
    %c4_i32 = arith.constant 4 : i32
    %30 = vector.broadcast %c4_i32 : i32 to vector<128x32xi32>
    %31 = arith.shrsi %29, %30 : vector<128x32xi32>
    %c15_i32 = arith.constant 15 : i32
    %32 = vector.broadcast %c15_i32 : i32 to vector<128x32xi32>
    %33 = arith.andi %29, %32 : vector<128x32xi32>
    %c64_i32 = arith.constant 64 : i32
    %34 = vector.broadcast %c64_i32 : i32 to vector<128x32xi32>
    %35 = arith.muli %31, %34 : vector<128x32xi32>
    %c2_i32_7 = arith.constant 2 : i32
    %36 = vector.broadcast %c2_i32_7 : i32 to vector<128x32xi32>
    %37 = arith.shrsi %33, %36 : vector<128x32xi32>
    %c16_i32 = arith.constant 16 : i32
    %38 = vector.broadcast %c16_i32 : i32 to vector<128x32xi32>
    %39 = arith.muli %37, %38 : vector<128x32xi32>
    %40 = arith.addi %35, %39 : vector<128x32xi32>
    %c3_i32_8 = arith.constant 3 : i32
    %41 = vector.broadcast %c3_i32_8 : i32 to vector<128x32xi32>
    %42 = arith.andi %33, %41 : vector<128x32xi32>
    %c2_i32_9 = arith.constant 2 : i32
    %43 = vector.broadcast %c2_i32_9 : i32 to vector<128x32xi32>
    %44 = arith.muli %42, %43 : vector<128x32xi32>
    %45 = arith.addi %40, %44 : vector<128x32xi32>
    %46 = arith.cmpi eq, %28, %45 : vector<128x32xi32>
    %cst_10 = arith.constant 1.000000e+00 : f32
    %cst_11 = arith.constant 0.000000e+00 : f32
    %47 = vector.broadcast %cst_10 : f32 to vector<128x32xf32>
    %48 = vector.broadcast %cst_11 : f32 to vector<128x32xf32>
    %49 = arith.select %46, %47, %48 : vector<128x32xi1>, vector<128x32xf32>
    %50 = vector.extract_strided_slice %0 {offsets = [0, 0], sizes = [32, 33], strides = [1, 1]} : vector<144x33xf32> to vector<32x33xf32>
    %51 = vector.extract_strided_slice %50 {offsets = [0, 0], sizes = [32, 4], strides = [1, 1]} : vector<32x33xf32> to vector<32x4xf32>
    %52 = vector.extract_strided_slice %50 {offsets = [0, 32], sizes = [32, 1], strides = [1, 1]} : vector<32x33xf32> to vector<32x1xf32>
    %cst_12 = arith.constant dense<0.000000e+00> : vector<32x512xf32>
    %53 = tpu.matmul %51, %5, %cst_12 {dimension_numbers = #tpu.dot_dimension_numbers<[1], [0], [0], [1], [0, 0, 1, 1], [], []>} : vector<32x4xf32>, vector<4x512xf32>, vector<32x512xf32> -> vector<32x512xf32>
    %54 = vector.broadcast %52 : vector<32x1xf32> to vector<32x512xf32>
    %55 = arith.addf %53, %54 : vector<32x512xf32>
    %cst_13 = arith.constant 0.000000e+00 : f32
    %56 = vector.broadcast %cst_13 : f32 to vector<32x512xf32>
    %57 = arith.maximumf %55, %56 : vector<32x512xf32>
    %cst_14 = arith.constant dense<0.000000e+00> : vector<32x128xf32>
    %58 = tpu.matmul %57, %27, %cst_14 {dimension_numbers = #tpu.dot_dimension_numbers<[1], [0], [0], [1], [0, 0, 1, 1], [], []>} : vector<32x512xf32>, vector<512x128xf32>, vector<32x128xf32> -> vector<32x128xf32>
    %59 = vector.extract_strided_slice %0 {offsets = [32, 0], sizes = [32, 33], strides = [1, 1]} : vector<144x33xf32> to vector<32x33xf32>
    %60 = vector.extract_strided_slice %59 {offsets = [0, 0], sizes = [32, 32], strides = [1, 1]} : vector<32x33xf32> to vector<32x32xf32>
    %61 = vector.extract_strided_slice %59 {offsets = [0, 32], sizes = [32, 1], strides = [1, 1]} : vector<32x33xf32> to vector<32x1xf32>
    %cst_15 = arith.constant dense<0.000000e+00> : vector<32x128xf32>
    %62 = tpu.matmul %60, %58, %cst_15 {dimension_numbers = #tpu.dot_dimension_numbers<[1], [0], [0], [1], [0, 0, 1, 1], [], []>} : vector<32x32xf32>, vector<32x128xf32>, vector<32x128xf32> -> vector<32x128xf32>
    %63 = vector.broadcast %61 : vector<32x1xf32> to vector<32x128xf32>
    %64 = arith.addf %62, %63 : vector<32x128xf32>
    %cst_16 = arith.constant 0.000000e+00 : f32
    %65 = vector.broadcast %cst_16 : f32 to vector<32x128xf32>
    %66 = arith.maximumf %64, %65 : vector<32x128xf32>
    %cst_17 = arith.constant dense<0.000000e+00> : vector<32x32xf32>
    %67 = tpu.matmul %66, %49, %cst_17 {dimension_numbers = #tpu.dot_dimension_numbers<[1], [0], [0], [1], [0, 0, 1, 1], [], []>} : vector<32x128xf32>, vector<128x32xf32>, vector<32x32xf32> -> vector<32x32xf32>
    %68 = vector.extract_strided_slice %0 {offsets = [64, 0], sizes = [32, 33], strides = [1, 1]} : vector<144x33xf32> to vector<32x33xf32>
    %69 = vector.extract_strided_slice %68 {offsets = [0, 0], sizes = [32, 32], strides = [1, 1]} : vector<32x33xf32> to vector<32x32xf32>
    %70 = vector.extract_strided_slice %68 {offsets = [0, 32], sizes = [32, 1], strides = [1, 1]} : vector<32x33xf32> to vector<32x1xf32>
    %cst_18 = arith.constant dense<0.000000e+00> : vector<32x32xf32>
    %71 = tpu.matmul %69, %67, %cst_18 {dimension_numbers = #tpu.dot_dimension_numbers<[1], [0], [0], [1], [0, 0, 1, 1], [], []>} : vector<32x32xf32>, vector<32x32xf32>, vector<32x32xf32> -> vector<32x32xf32>
    %72 = vector.broadcast %70 : vector<32x1xf32> to vector<32x32xf32>
    %73 = arith.addf %71, %72 : vector<32x32xf32>
    %cst_19 = arith.constant 0.000000e+00 : f32
    %74 = vector.broadcast %cst_19 : f32 to vector<32x32xf32>
    %75 = arith.maximumf %73, %74 : vector<32x32xf32>
    %76 = vector.extract_strided_slice %0 {offsets = [96, 0], sizes = [16, 33], strides = [1, 1]} : vector<144x33xf32> to vector<16x33xf32>
    %77 = vector.extract_strided_slice %76 {offsets = [0, 0], sizes = [16, 32], strides = [1, 1]} : vector<16x33xf32> to vector<16x32xf32>
    %78 = vector.extract_strided_slice %76 {offsets = [0, 32], sizes = [16, 1], strides = [1, 1]} : vector<16x33xf32> to vector<16x1xf32>
    %cst_20 = arith.constant dense<0.000000e+00> : vector<16x512xf32>
    %79 = tpu.matmul %77, %57, %cst_20 {dimension_numbers = #tpu.dot_dimension_numbers<[1], [0], [0], [1], [0, 0, 1, 1], [], []>} : vector<16x32xf32>, vector<32x512xf32>, vector<16x512xf32> -> vector<16x512xf32>
    %80 = vector.broadcast %78 : vector<16x1xf32> to vector<16x512xf32>
    %81 = arith.addf %79, %80 : vector<16x512xf32>
    %82 = vector.extract_strided_slice %81 {offsets = [0, 0], sizes = [8, 256], strides = [1, 1]} : vector<16x512xf32> to vector<8x256xf32>
    %c0_21 = arith.constant 0 : index
    %c0_22 = arith.constant 0 : index
    %c0_23 = arith.constant 0 : index
    %83 = vector.load %arg2[%c0_21, %c0_22, %c0_23] : memref<2x8x256xf32, #tpu.memory_space<vmem>>, vector<1x8x256xf32>
    %84 = vector.shape_cast %83 : vector<1x8x256xf32> to vector<8x256xf32>
    %85 = vector.shape_cast %82 : vector<8x256xf32> to vector<1x8x256xf32>
    tpu.vector_store %arg2[%c0_21, %c0_22, %c0_23], %85 {strides = array<i32>} : memref<2x8x256xf32, #tpu.memory_space<vmem>>, vector<1x8x256xf32>,
    %86 = vector.extract_strided_slice %81 {offsets = [8, 0], sizes = [4, 256], strides = [1, 1]} : vector<16x512xf32> to vector<4x256xf32>
    %c0_24 = arith.constant 0 : index
    %c0_25 = arith.constant 0 : index
    %c0_26 = arith.constant 0 : index
    %87 = vector.load %arg5[%c0_24, %c0_25, %c0_26] : memref<2x4x256xf32, #tpu.memory_space<vmem>>, vector<1x4x256xf32>
    %88 = vector.shape_cast %87 : vector<1x4x256xf32> to vector<4x256xf32>
    %89 = vector.shape_cast %86 : vector<4x256xf32> to vector<1x4x256xf32>
    tpu.vector_store %arg5[%c0_24, %c0_25, %c0_26], %89 {strides = array<i32>} : memref<2x4x256xf32, #tpu.memory_space<vmem>>, vector<1x4x256xf32>,
    %90 = vector.extract_strided_slice %81 {offsets = [0, 256], sizes = [8, 256], strides = [1, 1]} : vector<16x512xf32> to vector<8x256xf32>
    %c1_27 = arith.constant 1 : index
    %c0_28 = arith.constant 0 : index
    %c0_29 = arith.constant 0 : index
    %91 = vector.load %arg2[%c1_27, %c0_28, %c0_29] : memref<2x8x256xf32, #tpu.memory_space<vmem>>, vector<1x8x256xf32>
    %92 = vector.shape_cast %91 : vector<1x8x256xf32> to vector<8x256xf32>
    %93 = vector.shape_cast %90 : vector<8x256xf32> to vector<1x8x256xf32>
    tpu.vector_store %arg2[%c1_27, %c0_28, %c0_29], %93 {strides = array<i32>} : memref<2x8x256xf32, #tpu.memory_space<vmem>>, vector<1x8x256xf32>,
    %94 = vector.extract_strided_slice %81 {offsets = [8, 256], sizes = [4, 256], strides = [1, 1]} : vector<16x512xf32> to vector<4x256xf32>
    %c1_30 = arith.constant 1 : index
    %c0_31 = arith.constant 0 : index
    %c0_32 = arith.constant 0 : index
    %95 = vector.load %arg5[%c1_30, %c0_31, %c0_32] : memref<2x4x256xf32, #tpu.memory_space<vmem>>, vector<1x4x256xf32>
    %96 = vector.shape_cast %95 : vector<1x4x256xf32> to vector<4x256xf32>
    %97 = vector.shape_cast %94 : vector<4x256xf32> to vector<1x4x256xf32>
    tpu.vector_store %arg5[%c1_30, %c0_31, %c0_32], %97 {strides = array<i32>} : memref<2x4x256xf32, #tpu.memory_space<vmem>>, vector<1x4x256xf32>,
    %98 = vector.extract_strided_slice %0 {offsets = [112, 0], sizes = [16, 33], strides = [1, 1]} : vector<144x33xf32> to vector<16x33xf32>
    %99 = vector.extract_strided_slice %98 {offsets = [0, 0], sizes = [16, 32], strides = [1, 1]} : vector<16x33xf32> to vector<16x32xf32>
    %100 = vector.extract_strided_slice %98 {offsets = [0, 32], sizes = [16, 1], strides = [1, 1]} : vector<16x33xf32> to vector<16x1xf32>
    %cst_33 = arith.constant dense<0.000000e+00> : vector<16x128xf32>
    %101 = tpu.matmul %99, %66, %cst_33 {dimension_numbers = #tpu.dot_dimension_numbers<[1], [0], [0], [1], [0, 0, 1, 1], [], []>} : vector<16x32xf32>, vector<32x128xf32>, vector<16x128xf32> -> vector<16x128xf32>
    %102 = vector.broadcast %100 : vector<16x1xf32> to vector<16x128xf32>
    %103 = arith.addf %101, %102 : vector<16x128xf32>
    %104 = vector.extract_strided_slice %103 {offsets = [0, 0], sizes = [8, 64], strides = [1, 1]} : vector<16x128xf32> to vector<8x64xf32>
    %c0_34 = arith.constant 0 : index
    %c0_35 = arith.constant 0 : index
    %c0_36 = arith.constant 0 : index
    %105 = vector.load %arg3[%c0_34, %c0_35, %c0_36] : memref<2x8x64xf32, #tpu.memory_space<vmem>>, vector<1x8x64xf32>
    %106 = vector.shape_cast %105 : vector<1x8x64xf32> to vector<8x64xf32>
    %107 = vector.shape_cast %104 : vector<8x64xf32> to vector<1x8x64xf32>
    tpu.vector_store %arg3[%c0_34, %c0_35, %c0_36], %107 {strides = array<i32>} : memref<2x8x64xf32, #tpu.memory_space<vmem>>, vector<1x8x64xf32>,
    %108 = vector.extract_strided_slice %103 {offsets = [8, 0], sizes = [4, 64], strides = [1, 1]} : vector<16x128xf32> to vector<4x64xf32>
    %c0_37 = arith.constant 0 : index
    %c0_38 = arith.constant 0 : index
    %c0_39 = arith.constant 0 : index
    %109 = vector.load %arg6[%c0_37, %c0_38, %c0_39] : memref<2x4x64xf32, #tpu.memory_space<vmem>>, vector<1x4x64xf32>
    %110 = vector.shape_cast %109 : vector<1x4x64xf32> to vector<4x64xf32>
    %111 = vector.shape_cast %108 : vector<4x64xf32> to vector<1x4x64xf32>
    tpu.vector_store %arg6[%c0_37, %c0_38, %c0_39], %111 {strides = array<i32>} : memref<2x4x64xf32, #tpu.memory_space<vmem>>, vector<1x4x64xf32>,
    %112 = vector.extract_strided_slice %103 {offsets = [0, 64], sizes = [8, 64], strides = [1, 1]} : vector<16x128xf32> to vector<8x64xf32>
    %c1_40 = arith.constant 1 : index
    %c0_41 = arith.constant 0 : index
    %c0_42 = arith.constant 0 : index
    %113 = vector.load %arg3[%c1_40, %c0_41, %c0_42] : memref<2x8x64xf32, #tpu.memory_space<vmem>>, vector<1x8x64xf32>
    %114 = vector.shape_cast %113 : vector<1x8x64xf32> to vector<8x64xf32>
    %115 = vector.shape_cast %112 : vector<8x64xf32> to vector<1x8x64xf32>
    tpu.vector_store %arg3[%c1_40, %c0_41, %c0_42], %115 {strides = array<i32>} : memref<2x8x64xf32, #tpu.memory_space<vmem>>, vector<1x8x64xf32>,
    %116 = vector.extract_strided_slice %103 {offsets = [8, 64], sizes = [4, 64], strides = [1, 1]} : vector<16x128xf32> to vector<4x64xf32>
    %c1_43 = arith.constant 1 : index
    %c0_44 = arith.constant 0 : index
    %c0_45 = arith.constant 0 : index
    %117 = vector.load %arg6[%c1_43, %c0_44, %c0_45] : memref<2x4x64xf32, #tpu.memory_space<vmem>>, vector<1x4x64xf32>
    %118 = vector.shape_cast %117 : vector<1x4x64xf32> to vector<4x64xf32>
    %119 = vector.shape_cast %116 : vector<4x64xf32> to vector<1x4x64xf32>
    tpu.vector_store %arg6[%c1_43, %c0_44, %c0_45], %119 {strides = array<i32>} : memref<2x4x64xf32, #tpu.memory_space<vmem>>, vector<1x4x64xf32>,
    %120 = vector.extract_strided_slice %0 {offsets = [128, 0], sizes = [16, 33], strides = [1, 1]} : vector<144x33xf32> to vector<16x33xf32>
    %121 = vector.extract_strided_slice %120 {offsets = [0, 0], sizes = [16, 32], strides = [1, 1]} : vector<16x33xf32> to vector<16x32xf32>
    %122 = vector.extract_strided_slice %120 {offsets = [0, 32], sizes = [16, 1], strides = [1, 1]} : vector<16x33xf32> to vector<16x1xf32>
    %cst_46 = arith.constant dense<0.000000e+00> : vector<16x32xf32>
    %123 = tpu.matmul %121, %75, %cst_46 {dimension_numbers = #tpu.dot_dimension_numbers<[1], [0], [0], [1], [0, 0, 1, 1], [], []>} : vector<16x32xf32>, vector<32x32xf32>, vector<16x32xf32> -> vector<16x32xf32>
    %124 = vector.broadcast %122 : vector<16x1xf32> to vector<16x32xf32>
    %125 = arith.addf %123, %124 : vector<16x32xf32>
    %126 = vector.extract_strided_slice %125 {offsets = [0, 0], sizes = [8, 16], strides = [1, 1]} : vector<16x32xf32> to vector<8x16xf32>
    %c0_47 = arith.constant 0 : index
    %c0_48 = arith.constant 0 : index
    %c0_49 = arith.constant 0 : index
    %127 = vector.load %arg4[%c0_47, %c0_48, %c0_49] : memref<2x8x16xf32, #tpu.memory_space<vmem>>, vector<1x8x16xf32>
    %128 = vector.shape_cast %127 : vector<1x8x16xf32> to vector<8x16xf32>
    %129 = vector.shape_cast %126 : vector<8x16xf32> to vector<1x8x16xf32>
    tpu.vector_store %arg4[%c0_47, %c0_48, %c0_49], %129 {strides = array<i32>} : memref<2x8x16xf32, #tpu.memory_space<vmem>>, vector<1x8x16xf32>,
    %130 = vector.extract_strided_slice %125 {offsets = [8, 0], sizes = [4, 16], strides = [1, 1]} : vector<16x32xf32> to vector<4x16xf32>
    %c0_50 = arith.constant 0 : index
    %c0_51 = arith.constant 0 : index
    %c0_52 = arith.constant 0 : index
    %131 = vector.load %arg7[%c0_50, %c0_51, %c0_52] : memref<2x4x16xf32, #tpu.memory_space<vmem>>, vector<1x4x16xf32>
    %132 = vector.shape_cast %131 : vector<1x4x16xf32> to vector<4x16xf32>
    %133 = vector.shape_cast %130 : vector<4x16xf32> to vector<1x4x16xf32>
    tpu.vector_store %arg7[%c0_50, %c0_51, %c0_52], %133 {strides = array<i32>} : memref<2x4x16xf32, #tpu.memory_space<vmem>>, vector<1x4x16xf32>,
    %134 = vector.extract_strided_slice %125 {offsets = [0, 16], sizes = [8, 16], strides = [1, 1]} : vector<16x32xf32> to vector<8x16xf32>
    %c1_53 = arith.constant 1 : index
    %c0_54 = arith.constant 0 : index
    %c0_55 = arith.constant 0 : index
    %135 = vector.load %arg4[%c1_53, %c0_54, %c0_55] : memref<2x8x16xf32, #tpu.memory_space<vmem>>, vector<1x8x16xf32>
    %136 = vector.shape_cast %135 : vector<1x8x16xf32> to vector<8x16xf32>
    %137 = vector.shape_cast %134 : vector<8x16xf32> to vector<1x8x16xf32>
    tpu.vector_store %arg4[%c1_53, %c0_54, %c0_55], %137 {strides = array<i32>} : memref<2x8x16xf32, #tpu.memory_space<vmem>>, vector<1x8x16xf32>,
    %138 = vector.extract_strided_slice %125 {offsets = [8, 16], sizes = [4, 16], strides = [1, 1]} : vector<16x32xf32> to vector<4x16xf32>
    %c1_56 = arith.constant 1 : index
    %c0_57 = arith.constant 0 : index
    %c0_58 = arith.constant 0 : index
    %139 = vector.load %arg7[%c1_56, %c0_57, %c0_58] : memref<2x4x16xf32, #tpu.memory_space<vmem>>, vector<1x4x16xf32>
    %140 = vector.shape_cast %139 : vector<1x4x16xf32> to vector<4x16xf32>
    %141 = vector.shape_cast %138 : vector<4x16xf32> to vector<1x4x16xf32>
    tpu.vector_store %arg7[%c1_56, %c0_57, %c0_58], %141 {strides = array<i32>} : memref<2x4x16xf32, #tpu.memory_space<vmem>>, vector<1x4x16xf32>,
    return
  }
}

</mosaic_0001>

<bundles_post_ra>
// kernel: onnx_tracer_forward.1
= control target key start
LH: loop header
LB: loop body
LE: loop exit
PB: predicated region body
PF: predicated region fallthrough
CT: control target
= control target key end

     0   :  { %vm316_vm0 = vcmask 1043456   ;;  %v1920_v2 = vmov 0.0   ;;  %v1921_v7 = vmov 32   ;;  %vm307_vm1 = vcmask 31744   ;;  %s1924_s10 = smov 112   ;;  %s2536_s0 = inlined_call_operand.vmem [shape: f32[2,4,256], index: 0, kind: input, shape index: {}]   ;;  %s2537_s1 = inlined_call_operand.vmem [shape: f32[144,33], index: 1, kind: input, shape index: {}]   ;;  %s2538_s6 = inlined_call_operand.vmem [shape: f32[2,4,64], index: 6, kind: output, shape index: {4}]   ;;  %s2539_s3 = inlined_call_operand.vmem [shape: f32[2,8,64], index: 3, kind: output, shape index: {1}]   ;;  %s2540_s2 = inlined_call_operand.vmem [shape: f32[2,8,256], index: 2, kind: output, shape index: {0}]   ;;  %s2541_s5 = inlined_call_operand.vmem [shape: f32[2,4,256], index: 5, kind: output, shape index: {3}]   ;;  %s2542_s7 = inlined_call_operand.vmem [shape: f32[2,4,16], index: 7, kind: output, shape index: {5}]   ;;  %s2543_s4 = inlined_call_operand.vmem [shape: f32[2,8,16], index: 4, kind: output, shape index: {2}]  }
   0x1   :  { %v35_v0 = vld [vmem:[%s2536_s0] sm:$0xff]  ;;  %v1427_v1 = vld [vmem:[%s2536_s0 + $0x8] sm:$0xff]  ;;  %389 = vmatprep.mubr.f32.mxu0 %v1920_v2  ;;  %478 = vmatprep.mubr.f32.mxu1 %v1920_v2  ;;  %v19_v6 = vld [vmem:[%s2537_s1 + $0x10] sm:$0xff]  ;;  %v42_v10 = vlaneseq  ;;  %v1922_v45 = vmov 1.0|1.0  }
   0x2   :  { %v39_v3 = vcombine.high %v35_v0, %v35_v0  ;;  %v41_v4 = vcombine.high %v1427_v1, %v1427_v1  ;;  %v17_v5 = vld [vmem:[%s2537_s1] sm:$0xff]  ;;  %1916 = vset.pattern.permute.xlu0 %v1921_v7  ;;  %1917 = vset.pattern.permute.xlu1 %v1921_v7  ;;  %v18_v8 = vld [vmem:[%s2537_s1 + $0x8] sm:$0xff]  ;;  %v20_v9 = vld [vmem:[%s2537_s1 + $0x18] sm:$0xff] }
   0x3   :  { %289 = vperm.xlu0 %1916, %v17_v5   ;;  %299 = vperm.xlu1 %1917, %v19_v6   ;;  %v1996_v11 = vld [vmem:[%s2537_s1 + $0x20] sm:$0xff]  ;;  %v2001_v12 = vld [vmem:[%s2537_s1 + $0x28] sm:$0xff]  ;;  %v2003_v13 = vand.u32 127, %v42_v10  ;;  %v2013_v16 = vshrl.u32 %v42_v10, 7  ;;  %v2018_v17 = vld [vmem:[%s2537_s1 + $0x30] sm:$0xff] }
   0x4   :  { %1428 = vmatprep.subr.msk.mxu0 %vm316_vm0, %v39_v3  ;;  %1434 = vmatprep.subr.msk.mxu1 %vm316_vm0, %v41_v4  ;;  %v2023_v18 = vld [vmem:[%s2537_s1 + $0x38] sm:$0xff]  ;;  %v2035_v25 = vld [vmem:[%s2537_s1 + $0x40] sm:$0xff]  ;;  %v2040_v26 = vld [vmem:[%s2537_s1 + $0x48] sm:$0xff] }
   0x5   :  { %1429 = vmatpush1.msk.msra.mxu0 %vm316_vm0, %v35_v0  ;;  %1435 = vmatpush1.msk.msra.mxu1 %vm316_vm0, %v1427_v1  ;;  %v109_v14 = vshra.s32 %v2003_v13, 6  ;;  %v110_v15 = vand.u32 63, %v2003_v13  ;;  %v59_v24 = vadd.s32 128, %v2013_v16  ;;  %v60_v27 = vadd.s32 136, %v2013_v16  ;;  %v2071_v43 = vld [vmem:[%s2537_s1 + $0x50] sm:$0xff]  ;;  %v2076_v44 = vld [vmem:[%s2537_s1 + $0x58] sm:$0xff] }
   0x6   :  { %1430 = vmatmul.mubr.msk.f32.vlgmr.msra.gmra.mrb[0].mxu0 %vm307_vm1, %v17_v5  ;;  %1436 = vmatmul.mubr.msk.f32.vlgmr.msra.gmra.mrb[0].mxu1 %vm307_vm1, %v17_v5  ;;  %v91_v29 = vadd.s32 384, %v2013_v16  ;;  %v92_v30 = vadd.s32 392, %v2013_v16  ;;  %v2048_v31 = vadd.s32 8, %v2013_v16  ;;  %v75_v32 = vadd.s32 256, %v2013_v16  ;;  %v2102_v50 = vld [vmem:[%s2537_s1 + $0x70] sm:$0xff]  ;;  %v2107_v51 = vld [vmem:[%s2537_s1 + $0x78] sm:$0xff] }
   0x7   :  { %395 = vmatprep.mubr.f32.mxu0 %v1920_v2  ;;  %484 = vmatprep.mubr.f32.mxu1 %v1920_v2  ;;  %v111_v19 = vmul.u32 256, %v109_v14  ;;  %v112_v20 = vshra.s32 %v110_v15, 3  ;;  %v115_v21 = vand.u32 7, %v110_v15  ;;  %v76_v33 = vadd.s32 264, %v2013_v16  ;;  %v2158_v60 = vld [vmem:[%s2537_s1 + $0x80] sm:$0xff]  ;;  %v2163_v61 = vld [vmem:[%s2537_s1 + $0x88] sm:$0xff] }
   0x8   :  { %294 = vperm.xlu0 %1916, %v18_v8   ;;  %304 = vperm.xlu1 %1917, %v20_v9   ;;  %v61_v34 = vadd.s32 144, %v2013_v16  ;;  %v62_v36 = vadd.s32 152, %v2013_v16  ;;  %v93_v37 = vadd.s32 400, %v2013_v16  ;;  %v94_v38 = vadd.s32 408, %v2013_v16  ;;  %v2214_v7 = vld [vmem:[%s2537_s1 + $0x68] sm:$0xff] }
   0x9   :  { %v113_v22 = vmul.u32 32, %v112_v20  ;;  %v116_v23 = vmul.u32 2, %v115_v21  ;;  %v2061_v39 = vadd.s32 16, %v2013_v16  ;;  %v2064_v40 = vadd.s32 24, %v2013_v16 }
   0xa   :  { %1431 = vmatmul.mubr.msk.f32.gmra.mrb[2].mxu0 %vm307_vm1, %v18_v8  ;;  %1437 = vmatmul.mubr.msk.f32.gmra.mrb[2].mxu1 %vm307_vm1, %v18_v8  ;;  %v77_v41 = vadd.s32 272, %v2013_v16  ;;  %v78_v42 = vadd.s32 280, %v2013_v16  ;;  %v63_v46 = vadd.s32 160, %v2013_v16  ;;  %v64_v47 = vadd.s32 168, %v2013_v16  ;;  %v2219_v8 = vld [vmem:[%s2537_s1 + $0x60] sm:$0xff]  ;;  %s1923_s1 = smov 64  }
   0xb   :  { %401 = vmatprep.mubr.f32.mxu0 %v1920_v2  ;;  %490 = vmatprep.mubr.f32.mxu1 %v1920_v2  ;;  %v114_v28 = vadd.s32 %v113_v22, %v111_v19  ;;  %v95_v48 = vadd.s32 416, %v2013_v16  ;;  %v96_v49 = vadd.s32 424, %v2013_v16  ;;  %v2120_v52 = vadd.s32 32, %v2013_v16 }
   0xc   :  { %691 = vperm.xlu0 %1916, %v1996_v11   ;;  %696 = vperm.xlu1 %1917, %v2001_v12   ;;  %v2123_v53 = vadd.s32 40, %v2013_v16  ;;  %v79_v54 = vadd.s32 288, %v2013_v16  ;;  %v80_v55 = vadd.s32 296, %v2013_v16  ;;  %v65_v56 = vadd.s32 176, %v2013_v16 }
   0xd   :  { %v2053_v35 = vadd.s32 %v116_v23, %v114_v28  ;;  %v66_v57 = vadd.s32 184, %v2013_v16  ;;  %v97_v58 = vadd.s32 432, %v2013_v16  ;;  %v98_v59 = vadd.s32 440, %v2013_v16 }
   0xe   :  { %1432 = vmatmul.mubr.msk.f32.gmra.mrb[4].mxu0 %vm307_vm1, %v19_v6  ;;  %1438 = vmatmul.mubr.msk.f32.gmra.mrb[4].mxu1 %vm307_vm1, %v19_v6  ;;  %v2176_v62 = vadd.s32 48, %v2013_v16  ;;  %v2179_v63 = vadd.s32 56, %v2013_v16  ;;  %v81_v0 = vadd.s32 304, %v2013_v16  ;;  %v82_v1 = vadd.s32 312, %v2013_v16 }
   0xf   :  { %407 = vmatprep.mubr.f32.mxu0 %v1920_v2  ;;  %496 = vmatprep.mubr.f32.mxu1 %v1920_v2  ;;  %vm134_vm2 = vcmp.eq.s32.totalorder %v59_v24, %v2053_v35  ;;  %vm135_vm3 = vcmp.eq.s32.totalorder %v60_v27, %v2053_v35  ;;  %vm166_vm4 = vcmp.eq.s32.totalorder %v91_v29, %v2053_v35  ;;  %v67_v3 = vadd.s32 192, %v2013_v16 }
  0x10   :  { %701 = vperm.xlu0 %1916, %v2018_v17   ;;  %706 = vperm.xlu1 %1917, %v2023_v18   ;;  %vm167_vm5 = vcmp.eq.s32.totalorder %v92_v30, %v2053_v35  ;;  %vm1767_vm6 = vmpackc.low %vm135_vm3, %vm134_vm2  ;;  %vm118_vm7 = vcmp.eq.s32.totalorder %v2013_v16, %v2053_v35  ;;  %vm119_vm8 = vcmp.eq.s32.totalorder %v2048_v31, %v2053_v35  ;;  %v68_v4 = vadd.s32 200, %v2013_v16 }
  0x11   :  { %vm150_vm9 = vcmp.eq.s32.totalorder %v75_v32, %v2053_v35  ;;  %vm151_vm10 = vcmp.eq.s32.totalorder %v76_v33, %v2053_v35  ;;  %1768 = vmatprep.subr.msk.bf16.mxu0 %vm1767_vm6, %v1922_v45  ;;  %vm1799_vm11 = vmpackc.low %vm167_vm5, %vm166_vm4  ;;  %vm136_vm12 = vcmp.eq.s32.totalorder %v61_v34, %v2053_v35  ;;  %vm137_vm13 = vcmp.eq.s32.totalorder %v62_v36, %v2053_v35 }
  0x12   :  { %1433 = vmatmul.mubr.msk.f32.gmra.mrb[6].mxu0 %vm307_vm1, %v20_v9  ;;  %1439 = vmatmul.mubr.msk.f32.gmra.mrb[6].mxu1 %vm307_vm1, %v20_v9  ;;  %vm1769_vm14 = vmpackc.low %vm119_vm8, %vm118_vm7  ;;  %vm168_vm15 = vcmp.eq.s32.totalorder %v93_v37, %v2053_v35  ;;  %vm169_vm0 = vcmp.eq.s32.totalorder %v94_v38, %v2053_v35  ;;  %vm120_vm2 = vcmp.eq.s32.totalorder %v2061_v39, %v2053_v35  ;;  %v99_v5 = vadd.s32 448, %v2013_v16 }
  0x13   :  { %1800 = vmatprep.subr.msk.bf16.mxu1 %vm1799_vm11, %v1922_v45  ;;  %1770 = vmatpush3.bf16.msk.msra.mxu0 %vm1769_vm14, %v1922_v45  ;;  %vm1801_vm1 = vmpackc.low %vm151_vm10, %vm150_vm9  ;;  %vm121_vm3 = vcmp.eq.s32.totalorder %v2064_v40, %v2053_v35  ;;  %vm152_vm5 = vcmp.eq.s32.totalorder %v77_v41, %v2053_v35  ;;  %vm153_vm6 = vcmp.eq.s32.totalorder %v78_v42, %v2053_v35  ;;  %v100_v6 = vadd.s32 456, %v2013_v16 }
  0x14   :  { %894 = vperm.xlu0 %1916, %v2035_v25   ;;  %899 = vperm.xlu1 %1917, %v2040_v26   ;;  %vm1771_vm4 = vmpackc.low %vm137_vm13, %vm136_vm12  ;;  %vm138_vm8 = vcmp.eq.s32.totalorder %v63_v46, %v2053_v35  ;;  %vm139_vm9 = vcmp.eq.s32.totalorder %v64_v47, %v2053_v35  ;;  %vm170_vm11 = vcmp.eq.s32.totalorder %v95_v48, %v2053_v35  ;;  %v2232_v9 = vadd.s32 64, %v2013_v16 }
  0x15   :  { %1802 = vmatpush3.bf16.msk.msra.mxu1 %vm1801_vm1, %v1922_v45  ;;  %1772 = vmatprep.subr.msk.bf16.mxu0 %vm1771_vm4, %v1922_v45  ;;  %vm1803_vm7 = vmpackc.low %vm169_vm0, %vm168_vm15  ;;  %vm171_vm12 = vcmp.eq.s32.totalorder %v96_v49, %v2053_v35  ;;  %vm122_vm14 = vcmp.eq.s32.totalorder %v2120_v52, %v2053_v35  ;;  %vm123_vm15 = vcmp.eq.s32.totalorder %v2123_v53, %v2053_v35  ;;  %v2235_v10 = vadd.s32 72, %v2013_v16 }
  0x16   :  { %vm1773_vm10 = vmpackc.low %vm121_vm3, %vm120_vm2  ;;  %1804 = vmatprep.subr.msk.bf16.mxu1 %vm1803_vm7, %v1922_v45  ;;  %vm154_vm1 = vcmp.eq.s32.totalorder %v79_v54, %v2053_v35  ;;  %vm155_vm2 = vcmp.eq.s32.totalorder %v80_v55, %v2053_v35  ;;  %vm140_vm4 = vcmp.eq.s32.totalorder %v65_v56, %v2053_v35  ;;  %vm172_vm7 = vcmp.eq.s32.totalorder %v97_v58, %v2053_v35 }
  0x17   :  { %1774 = vmatpush3.bf16.msk.msra.mxu0 %vm1773_vm10, %v1922_v45  ;;  %vm1805_vm13 = vmpackc.low %vm153_vm6, %vm152_vm5  ;;  %vm141_vm5 = vcmp.eq.s32.totalorder %v66_v57, %v2053_v35  ;;  %vm124_vm10 = vcmp.eq.s32.totalorder %v2176_v62, %v2053_v35  ;;  %v83_v14 = vadd.s32 320, %v2013_v16  ;;  %v84_v15 = vadd.s32 328, %v2013_v16 }
  0x18   :  { %904 = vperm.xlu0 %1916, %v2071_v43   ;;  %909 = vperm.xlu1 %1917, %v2076_v44   ;;  %vm1775_vm0 = vmpackc.low %vm139_vm9, %vm138_vm8  ;;  %vm173_vm8 = vcmp.eq.s32.totalorder %v98_v59, %v2053_v35  ;;  %v69_v19 = vadd.s32 208, %v2013_v16  ;;  %v70_v20 = vadd.s32 216, %v2013_v16  ;;  %v101_v21 = vadd.s32 464, %v2013_v16 }
  0x19   :  { %1806 = vmatpush3.bf16.msk.msra.mxu1 %vm1805_vm13, %v1922_v45  ;;  %1776 = vmatprep.subr.msk.bf16.mxu0 %vm1775_vm0, %v1922_v45  ;;  %vm1807_vm3 = vmpackc.low %vm171_vm12, %vm170_vm11  ;;  %vm125_vm11 = vcmp.eq.s32.totalorder %v2179_v63, %v2053_v35  ;;  %vm156_vm13 = vcmp.eq.s32.totalorder %v81_v0, %v2053_v35  ;;  %vm142_vm0 = vcmp.eq.s32.totalorder %v67_v3, %v2053_v35  ;;  %v102_v22 = vadd.s32 472, %v2013_v16 }
  0x1a   :  { %vm1777_vm6 = vmpackc.low %vm123_vm15, %vm122_vm14  ;;  %1808 = vmatprep.subr.msk.bf16.mxu1 %vm1807_vm3, %v1922_v45  ;;  %vm157_vm14 = vcmp.eq.s32.totalorder %v82_v1, %v2053_v35  ;;  %vm174_vm3 = vcmp.eq.s32.totalorder %v99_v5, %v2053_v35  ;;  %v2278_v23 = vadd.s32 80, %v2013_v16  ;;  %v2281_v24 = vadd.s32 88, %v2013_v16 }
  0x1b   :  { %1778 = vmatpush3.bf16.msk.msra.mxu0 %vm1777_vm6, %v1922_v45  ;;  %vm1809_vm9 = vmpackc.low %vm155_vm2, %vm154_vm1  ;;  %vm143_vm1 = vcmp.eq.s32.totalorder %v68_v4, %v2053_v35  ;;  %vm126_vm6 = vcmp.eq.s32.totalorder %v2232_v9, %v2053_v35  ;;  %v85_v27 = vadd.s32 336, %v2013_v16  ;;  %v86_v28 = vadd.s32 344, %v2013_v16 }
  0x1c   :  { %1195 = vperm.xlu0 %1916, %v2102_v50   ;;  %1200 = vperm.xlu1 %1917, %v2107_v51   ;;  %vm1779_vm12 = vmpackc.low %vm141_vm5, %vm140_vm4  ;;  %vm175_vm4 = vcmp.eq.s32.totalorder %v100_v6, %v2053_v35  ;;  %v71_v29 = vadd.s32 224, %v2013_v16  ;;  %v72_v30 = vadd.s32 232, %v2013_v16  ;;  %v103_v32 = vadd.s32 480, %v2013_v16 }
  0x1d   :  { %1810 = vmatpush3.bf16.msk.msra.mxu1 %vm1809_vm9, %v1922_v45  ;;  %1780 = vmatprep.subr.msk.bf16.mxu0 %vm1779_vm12, %v1922_v45  ;;  %vm1811_vm15 = vmpackc.low %vm173_vm8, %vm172_vm7  ;;  %vm127_vm7 = vcmp.eq.s32.totalorder %v2235_v10, %v2053_v35  ;;  %vm158_vm9 = vcmp.eq.s32.totalorder %v83_v14, %v2053_v35  ;;  %vm144_vm12 = vcmp.eq.s32.totalorder %v69_v19, %v2053_v35  ;;  %v104_v33 = vadd.s32 488, %v2013_v16 }
  0x1e   :  { %vm1781_vm2 = vmpackc.low %vm125_vm11, %vm124_vm10  ;;  %1812 = vmatprep.subr.msk.bf16.mxu1 %vm1811_vm15, %v1922_v45  ;;  %vm159_vm10 = vcmp.eq.s32.totalorder %v84_v15, %v2053_v35  ;;  %vm176_vm15 = vcmp.eq.s32.totalorder %v101_v21, %v2053_v35  ;;  %v2337_v34 = vadd.s32 96, %v2013_v16  ;;  %v2340_v36 = vadd.s32 104, %v2013_v16 }
  0x1f   :  { %1782 = vmatpush3.bf16.msk.msra.mxu0 %vm1781_vm2, %v1922_v45  ;;  %vm1813_vm5 = vmpackc.low %vm157_vm14, %vm156_vm13  ;;  %vm145_vm13 = vcmp.eq.s32.totalorder %v70_v20, %v2053_v35  ;;  %vm128_vm2 = vcmp.eq.s32.totalorder %v2278_v23, %v2053_v35  ;;  %v87_v37 = vadd.s32 352, %v2013_v16  ;;  %v88_v38 = vadd.s32 360, %v2013_v16 }
  0x20   :  { %1300 = vperm.xlu0 %1916, %v2158_v60   ;;  %1305 = vperm.xlu1 %1917, %v2163_v61   ;;  %vm1783_vm8 = vmpackc.low %vm143_vm1, %vm142_vm0  ;;  %vm177_vm0 = vcmp.eq.s32.totalorder %v102_v22, %v2053_v35  ;;  %v73_v41 = vadd.s32 240, %v2013_v16  ;;  %v74_v42 = vadd.s32 248, %v2013_v16  ;;  %v105_v46 = vadd.s32 496, %v2013_v16 }
  0x21   :  { %1814 = vmatpush3.bf16.msk.msra.mxu1 %vm1813_vm5, %v1922_v45  ;;  %1784 = vmatprep.subr.msk.bf16.mxu0 %vm1783_vm8, %v1922_v45  ;;  %vm1815_vm11 = vmpackc.low %vm175_vm4, %vm174_vm3  ;;  %vm129_vm3 = vcmp.eq.s32.totalorder %v2281_v24, %v2053_v35  ;;  %vm160_vm5 = vcmp.eq.s32.totalorder %v85_v27, %v2053_v35  ;;  %vm146_vm8 = vcmp.eq.s32.totalorder %v71_v29, %v2053_v35  ;;  %v106_v47 = vadd.s32 504, %v2013_v16 }
  0x22   :  { %1816 = vmatprep.subr.msk.bf16.mxu1 %vm1815_vm11, %v1922_v45  ;;  %vm1785_vm14 = vmpackc.low %vm127_vm7, %vm126_vm6  ;;  %vm161_vm6 = vcmp.eq.s32.totalorder %v86_v28, %v2053_v35  ;;  %vm178_vm11 = vcmp.eq.s32.totalorder %v103_v32, %v2053_v35  ;;  %v2356_v48 = vadd.s32 112, %v2013_v16  ;;  %v2359_v49 = vadd.s32 120, %v2013_v16 }
  0x23   :  { %1786 = vmatpush3.bf16.msk.msra.mxu0 %vm1785_vm14, %v1922_v45  ;;  %vm1817_vm1 = vmpackc.low %vm159_vm10, %vm158_vm9  ;;  %vm147_vm9 = vcmp.eq.s32.totalorder %v72_v30, %v2053_v35  ;;  %vm179_vm14 = vcmp.eq.s32.totalorder %v104_v33, %v2053_v35  ;;  %v89_v54 = vadd.s32 368, %v2013_v16  ;;  %v90_v55 = vadd.s32 376, %v2013_v16 }
  0x24   :  { %1016 = vperm.xlu0 %1916, %v2214_v7   ;;  %1011 = vperm.xlu1 %1917, %v2219_v8   ;;  %vm1787_vm4 = vmpackc.low %vm145_vm13, %vm144_vm12 }
  0x25   :  { %1818 = vmatpush3.bf16.msk.msra.mxu1 %vm1817_vm1, %v1922_v45  ;;  %1788 = vmatprep.subr.msk.bf16.mxu0 %vm1787_vm4, %v1922_v45  ;;  %vm1819_vm7 = vmpackc.low %vm177_vm0, %vm176_vm15  ;;  %vm130_vm0 = vcmp.eq.s32.totalorder %v2337_v34, %v2053_v35  ;;  %vm131_vm1 = vcmp.eq.s32.totalorder %v2340_v36, %v2053_v35 }
  0x26   :  { %1820 = vmatprep.subr.msk.bf16.mxu1 %vm1819_vm7, %v1922_v45  ;;  %vm1789_vm10 = vmpackc.low %vm129_vm3, %vm128_vm2  ;;  %vm162_vm2 = vcmp.eq.s32.totalorder %v87_v37, %v2053_v35  ;;  %vm163_vm3 = vcmp.eq.s32.totalorder %v88_v38, %v2053_v35  ;;  %vm149_vm7 = vcmp.eq.s32.totalorder %v74_v42, %v2053_v35 }
  0x27   :  { %1790 = vmatpush3.bf16.msk.msra.mxu0 %vm1789_vm10, %v1922_v45  ;;  %vm1821_vm12 = vmpackc.low %vm161_vm6, %vm160_vm5  ;;  %vm148_vm6 = vcmp.eq.s32.totalorder %v73_v41, %v2053_v35 }
  0x28   :  { %vm1791_vm13 = vmpackc.low %vm147_vm9, %vm146_vm8  ;;  %vm180_vm8 = vcmp.eq.s32.totalorder %v105_v46, %v2053_v35  ;;  %vm181_vm9 = vcmp.eq.s32.totalorder %v106_v47, %v2053_v35 }
  0x29   :  { %1822 = vmatpush3.bf16.msk.msra.mxu1 %vm1821_vm12, %v1922_v45  ;;  %1792 = vmatprep.subr.msk.bf16.mxu0 %vm1791_vm13, %v1922_v45  ;;  %vm1823_vm15 = vmpackc.low %vm179_vm14, %vm178_vm11  ;;  %vm132_vm11 = vcmp.eq.s32.totalorder %v2356_v48, %v2053_v35  ;;  %vm133_vm14 = vcmp.eq.s32.totalorder %v2359_v49, %v2053_v35  ;;  %vm164_vm12 = vcmp.eq.s32.totalorder %v89_v54, %v2053_v35 }
  0x2a   :  { %1824 = vmatprep.subr.msk.bf16.mxu1 %vm1823_vm15, %v1922_v45  ;;  %vm1793_vm4 = vmpackc.low %vm131_vm1, %vm130_vm0  ;;  %vm165_vm13 = vcmp.eq.s32.totalorder %v90_v55, %v2053_v35 }
  0x2b   :  { %1794 = vmatpush3.bf16.msk.msra.mxu0 %vm1793_vm4, %v1922_v45  ;;  %vm1825_vm5 = vmpackc.low %vm163_vm3, %vm162_vm2  ;;  %vm709_vm2 = vcmask 261120  }
  0x2c   :  { %vm1795_vm10 = vmpackc.low %vm149_vm7, %vm148_vm6 }
  0x2d   :  { %1826 = vmatpush3.bf16.msk.msra.mxu1 %vm1825_vm5, %v1922_v45  ;;  %1796 = vmatprep.subr.msk.bf16.mxu0 %vm1795_vm10, %v1922_v45  ;;  %vm1827_vm15 = vmpackc.low %vm181_vm9, %vm180_vm8 }
  0x2e   :  { %1828 = vmatprep.subr.msk.bf16.mxu1 %vm1827_vm15, %v1922_v45  ;;  %vm1797_vm0 = vmpackc.low %vm133_vm14, %vm132_vm11 }
  0x2f   :  { %1798 = vmatpush3.bf16.msk.msra.mxu0 %vm1797_vm0, %v1922_v45  ;;  %vm1829_vm1 = vmpackc.low %vm165_vm13, %vm164_vm12 }
  0x31   :  { %1830 = vmatpush3.bf16.msk.msra.mxu1 %vm1829_vm1, %v1922_v45 }
  0x82   :  { %v290_v56 = vpop.permute.xlu0 %289  ;;  %v300_v6 = vpop.permute.xlu1 %299 }
  0x87   :  { %v295_v5 = vpop.permute.xlu0 %294 }
  0xd9   :  { %v391_v57 = vpop.f32.mrb[0].mxu0  ;;  %v480_v58 = vpop.f32.mrb[0].mxu1 }
  0xda   :  { %v392_v59 = vadd.f32 %v391_v57, %v290_v56  ;;  %v481_v0 = vadd.f32 %v480_v58, %v290_v56  ;;  %v393_v1 = vpop.f32.mrb[1].mxu0  ;;  %v482_v3 = vpop.f32.mrb[1].mxu1 }
  0xdb   :  { %v394_v4 = vadd.f32 %v393_v1, %v290_v56  ;;  %v483_v35 = vadd.f32 %v482_v3, %v290_v56 }
  0xdc   :  { %v503_v21 = vmax.f32 %v392_v59, 0.0  ;;  %v505_v22 = vmax.f32 %v481_v0, 0.0 }
  0xdd   :  { %v504_v14 = vmax.f32 %v394_v4, 0.0  ;;  %v506_v15 = vmax.f32 %v483_v35, 0.0  ;;  %v397_v19 = vpop.f32.mrb[2].mxu0  ;;  %v486_v20 = vpop.f32.mrb[2].mxu1 }
  0xde   :  { %v398_v27 = vadd.f32 %v397_v19, %v295_v5  ;;  %v487_v28 = vadd.f32 %v486_v20, %v295_v5  ;;  %v399_v29 = vpop.f32.mrb[3].mxu0  ;;  %v488_v30 = vpop.f32.mrb[3].mxu1 }
  0xdf   :  { %v400_v32 = vadd.f32 %v399_v29, %v295_v5  ;;  %v489_v33 = vadd.f32 %v488_v30, %v295_v5  ;;  %583 = vmatprep.mubr.f32.mxu0 %v504_v14  ;;  %668 = vmatprep.mubr.f32.mxu1 %v506_v15  ;;  %v305_v35 = vpop.permute.xlu1 %304 }
  0xe0   :  { %v507_v37 = vmax.f32 %v398_v27, 0.0  ;;  %v509_v38 = vmax.f32 %v487_v28, 0.0  ;;  %584 = vmatmul.mubr.f32.vlgmr.msra.gmra.mrb[8].mxu0 %v503_v21  ;;  %669 = vmatmul.mubr.f32.vlgmr.msra.gmra.mrb[8].mxu1 %v505_v22 }
  0xe1   :  { %v508_v41 = vmax.f32 %v400_v32, 0.0  ;;  %v510_v42 = vmax.f32 %v489_v33, 0.0  ;;  %v403_v46 = vpop.f32.mrb[4].mxu0  ;;  %v492_v47 = vpop.f32.mrb[4].mxu1 }
  0xe2   :  { %v2378_v54 = vpack.c.bf16 %v507_v37, %v503_v21  ;;  %v2380_v55 = vpack.c.bf16 %v509_v38, %v505_v22  ;;  %v404_v56 = vadd.f32 %v403_v46, %v300_v6  ;;  %v493_v57 = vadd.f32 %v492_v47, %v300_v6  ;;  %v405_v58 = vpop.f32.mrb[5].mxu0  ;;  %v494_v59 = vpop.f32.mrb[5].mxu1 }
  0xe3   :  { %v2382_v0 = vpack.c.bf16 %v508_v41, %v504_v14  ;;  %v2384_v1 = vpack.c.bf16 %v510_v42, %v506_v15  ;;  %v406_v3 = vadd.f32 %v405_v58, %v300_v6  ;;  %v495_v4 = vadd.f32 %v494_v59, %v300_v6  ;;  %588 = vmatprep.mubr.f32.mxu0 %v508_v41 }
  0xe4   :  { %673 = vmatprep.mubr.f32.mxu1 %v510_v42  ;;  %589 = vmatmul.mubr.f32.gmra.mrb[10].mxu0 %v507_v37  ;;  %v511_v22 = vmax.f32 %v404_v56, 0.0  ;;  %v513_v14 = vmax.f32 %v493_v57, 0.0  ;;  %v246_v56 = vshra.s32 %v2003_v13, 4  ;;  %v247_v57 = vand.u32 15, %v2003_v13 }
  0xe5   :  { %v512_v5 = vmax.f32 %v406_v3, 0.0  ;;  %v514_v19 = vmax.f32 %v495_v4, 0.0  ;;  %674 = vmatmul.mubr.f32.gmra.mrb[10].mxu1 %v509_v38  ;;  %v409_v20 = vpop.f32.mrb[6].mxu0  ;;  %v498_v21 = vpop.f32.mrb[6].mxu1 }
  0xe6   :  { %v410_v27 = vadd.f32 %v409_v20, %v305_v35  ;;  %v499_v28 = vadd.f32 %v498_v21, %v305_v35  ;;  %v411_v29 = vpop.f32.mrb[7].mxu0  ;;  %v500_v30 = vpop.f32.mrb[7].mxu1  ;;  %v248_v58 = vmul.u32 64, %v246_v56  ;;  %v249_v59 = vshra.s32 %v247_v57, 2 }
  0xe7   :  { %v412_v32 = vadd.f32 %v411_v29, %v305_v35  ;;  %v501_v15 = vadd.f32 %v500_v30, %v305_v35  ;;  %593 = vmatprep.mubr.f32.mxu0 %v512_v5  ;;  %678 = vmatprep.mubr.f32.mxu1 %v514_v19  ;;  %v252_v3 = vand.u32 3, %v247_v57  ;;  %v692_v56 = vpop.permute.xlu0 %691 }
  0xe8   :  { %v515_v6 = vmax.f32 %v410_v27, 0.0  ;;  %v517_v33 = vmax.f32 %v499_v28, 0.0  ;;  %594 = vmatmul.mubr.f32.gmra.mrb[12].mxu0 %v511_v22  ;;  %v250_v4 = vmul.u32 16, %v249_v59 }
  0xe9   :  { %v516_v41 = vmax.f32 %v412_v32, 0.0  ;;  %v518_v37 = vmax.f32 %v501_v15, 0.0  ;;  %679 = vmatmul.mubr.f32.gmra.mrb[12].mxu1 %v513_v14  ;;  %v253_v35 = vmul.u32 2, %v252_v3 }
  0xea   :  { %v2386_v42 = vpack.c.bf16 %v515_v6, %v511_v22  ;;  %v2388_v38 = vpack.c.bf16 %v517_v33, %v513_v14 }
  0xeb   :  { %v2390_v46 = vpack.c.bf16 %v516_v41, %v512_v5  ;;  %v2392_v47 = vpack.c.bf16 %v518_v37, %v514_v19  ;;  %598 = vmatprep.mubr.f32.mxu0 %v516_v41  ;;  %683 = vmatprep.mubr.f32.mxu1 %v518_v37  ;;  %v251_v5 = vadd.s32 %v250_v4, %v248_v58 }
  0xec   :  { %599 = vmatmul.mubr.f32.gmra.mrb[14].mxu0 %v515_v6 }
  0xed   :  { %684 = vmatmul.mubr.f32.gmra.mrb[14].mxu1 %v517_v33  ;;  %1687 = vmatprep.mubr.msk.f32.mxu0 %vm709_vm2, %v1996_v11  ;;  %v2398_v19 = vadd.s32 %v253_v35, %v251_v5  ;;  %v702_v35 = vpop.permute.xlu0 %701 }
  0xef   :  { %vm255_vm3 = vcmp.eq.s32.totalorder %v2013_v16, %v2398_v19  ;;  %vm256_vm4 = vcmp.eq.s32.totalorder %v2048_v31, %v2398_v19  ;;  %vm257_vm5 = vcmp.eq.s32.totalorder %v2061_v39, %v2398_v19  ;;  %vm258_vm6 = vcmp.eq.s32.totalorder %v2064_v40, %v2398_v19 }
  0xf0   :  { %vm1839_vm7 = vmpackc.low %vm256_vm4, %vm255_vm3  ;;  %vm259_vm9 = vcmp.eq.s32.totalorder %v2120_v52, %v2398_v19  ;;  %vm260_vm10 = vcmp.eq.s32.totalorder %v2123_v53, %v2398_v19  ;;  %vm261_vm14 = vcmp.eq.s32.totalorder %v2176_v62, %v2398_v19  ;;  %vm262_vm12 = vcmp.eq.s32.totalorder %v2179_v63, %v2398_v19 }
  0xf1   :  { %1840 = vmatprep.subr.msk.bf16.mxu1 %vm1839_vm7, %v1922_v45  ;;  %vm1843_vm8 = vmpackc.low %vm258_vm6, %vm257_vm5  ;;  %vm263_vm15 = vcmp.eq.s32.totalorder %v2232_v9, %v2398_v19  ;;  %vm264_vm0 = vcmp.eq.s32.totalorder %v2235_v10, %v2398_v19  ;;  %vm265_vm3 = vcmp.eq.s32.totalorder %v2278_v23, %v2398_v19  ;;  %vm266_vm4 = vcmp.eq.s32.totalorder %v2281_v24, %v2398_v19 }
  0xf2   :  { %1842 = vmatpush3.bf16.msk.msra.mxu1 %vm1839_vm7, %v1922_v45  ;;  %vm1847_vm11 = vmpackc.low %vm260_vm10, %vm259_vm9  ;;  %vm267_vm6 = vcmp.eq.s32.totalorder %v2337_v34, %v2398_v19  ;;  %vm268_vm7 = vcmp.eq.s32.totalorder %v2340_v36, %v2398_v19  ;;  %vm269_vm9 = vcmp.eq.s32.totalorder %v2356_v48, %v2398_v19  ;;  %vm270_vm10 = vcmp.eq.s32.totalorder %v2359_v49, %v2398_v19 }
  0xf3   :  { %1844 = vmatprep.subr.msk.bf16.mxu1 %vm1843_vm8, %v1922_v45  ;;  %vm1851_vm13 = vmpackc.low %vm262_vm12, %vm261_vm14  ;;  %vm1284_vm14 = vcmask 519168   ;;  %vm1282_vm12 = vcmask 523264  }
  0xf4   :  { %vm1855_vm1 = vmpackc.low %vm264_vm0, %vm263_vm15 }
  0xf5   :  { %vm1859_vm5 = vmpackc.low %vm266_vm4, %vm265_vm3 }
  0xf6   :  { %1846 = vmatpush3.bf16.msk.msra.mxu1 %vm1843_vm8, %v1922_v45  ;;  %vm1863_vm8 = vmpackc.low %vm268_vm7, %vm267_vm6 }
  0xf7   :  { %1848 = vmatprep.subr.msk.bf16.mxu1 %vm1847_vm11, %v1922_v45 }
  0xfa   :  { %1850 = vmatpush3.bf16.msk.msra.mxu1 %vm1847_vm11, %v1922_v45  ;;  %vm1867_vm11 = vmpackc.low %vm270_vm10, %vm269_vm9 }
  0xfb   :  { %1852 = vmatprep.subr.msk.bf16.mxu1 %vm1851_vm13, %v1922_v45 }
  0xfe   :  { %1854 = vmatpush3.bf16.msk.msra.mxu1 %vm1851_vm13, %v1922_v45  ;;  %vm1387_vm13 = vcmask 130048  }
  0xff   :  { %1856 = vmatprep.subr.msk.bf16.mxu1 %vm1855_vm1, %v1922_v45 }
 0x102   :  { %1858 = vmatpush3.bf16.msk.msra.mxu1 %vm1855_vm1, %v1922_v45 }
 0x103   :  { %1860 = vmatprep.subr.msk.bf16.mxu1 %vm1859_vm5, %v1922_v45 }
 0x106   :  { %1862 = vmatpush3.bf16.msk.msra.mxu1 %vm1859_vm5, %v1922_v45 }
 0x107   :  { %1864 = vmatprep.subr.msk.bf16.mxu1 %vm1863_vm8, %v1922_v45 }
 0x10a   :  { %1866 = vmatpush3.bf16.msk.msra.mxu1 %vm1863_vm8, %v1922_v45 }
 0x10b   :  { %1868 = vmatprep.subr.msk.bf16.mxu1 %vm1867_vm11, %v1922_v45 }
 0x10e   :  { %1870 = vmatpush3.bf16.msk.msra.mxu1 %vm1867_vm11, %v1922_v45 }
 0x1b3   :  { %v1575_v11 = vpop.f32.mrb[8].mxu0  ;;  %v1619_v13 = vpop.f32.mrb[8].mxu1 }
 0x1b4   :  { %v1576_v16 = vpop.f32.mrb[9].mxu0  ;;  %v1620_v31 = vpop.f32.mrb[9].mxu1 }
 0x1b5   :  { %v1577_v39 = vadd.f32 %v1576_v16, %v1575_v11  ;;  %v1621_v40 = vadd.f32 %v1620_v31, %v1619_v13  ;;  %v895_v31 = vpop.permute.xlu0 %894 }
 0x1b7   :  { %v671_v52 = vadd.f32 %v1621_v40, %v1577_v39  ;;  %v1578_v53 = vpop.f32.mrb[10].mxu0 }
 0x1b8   :  { %v1622_v62 = vpop.f32.mrb[10].mxu1  ;;  %v1579_v63 = vpop.f32.mrb[11].mxu0 }
 0x1b9   :  { %v1580_v9 = vadd.f32 %v1579_v63, %v1578_v53  ;;  %v1623_v10 = vpop.f32.mrb[11].mxu1 }
 0x1ba   :  { %v1624_v23 = vadd.f32 %v1623_v10, %v1622_v62  ;;  %v905_v62 = vpop.permute.xlu0 %904 }
 0x1bb   :  { %v1581_v24 = vpop.f32.mrb[12].mxu0 }
 0x1bc   :  { %v676_v34 = vadd.f32 %v1624_v23, %v1580_v9  ;;  %v1625_v36 = vpop.f32.mrb[12].mxu1  ;;  %v1582_v20 = vpop.f32.mrb[13].mxu0 }
 0x1bd   :  { %v1583_v21 = vadd.f32 %v1582_v20, %v1581_v24  ;;  %v1626_v22 = vpop.f32.mrb[13].mxu1 }
 0x1be   :  { %v1627_v27 = vadd.f32 %v1626_v22, %v1625_v36  ;;  %v1831_v28 = vpack.c.bf16 %v676_v34, %v671_v52  ;;  %v1196_v24 = vpop.permute.xlu0 %1195 }
 0x1bf   :  { %v1584_v29 = vpop.f32.mrb[14].mxu0 }
 0x1c0   :  { %v681_v30 = vadd.f32 %v1627_v27, %v1583_v21  ;;  %v1628_v14 = vpop.f32.mrb[14].mxu1  ;;  %1832 = vmatprep.subr.bf16.mxu0 %v1831_v28  ;;  %v1585_v32 = vpop.f32.mrb[15].mxu0 }
 0x1c1   :  { %v1586_v15 = vadd.f32 %v1585_v32, %v1584_v29  ;;  %v1629_v6 = vpop.f32.mrb[15].mxu1  ;;  %1834 = vmatpush3.bf16.msra.mxu0 %v1831_v28 }
 0x1c2   :  { %v1630_v33 = vadd.f32 %v1629_v6, %v1628_v14 }
 0x1c4   :  { %v686_v41 = vadd.f32 %v1630_v33, %v1586_v15 }
 0x1c6   :  { %v1835_v37 = vpack.c.bf16 %v686_v41, %v681_v30 }
 0x1c8   :  { %1836 = vmatprep.subr.bf16.mxu0 %v1835_v37 }
 0x1c9   :  { %1838 = vmatpush3.bf16.msra.mxu0 %v1835_v37 }
 0x1cc   :  { %1688 = vmatmul.mubr.msk.f32.vlgmr.msra.gmra.mrb[16].mxu0 %vm709_vm2, %v2001_v12  ;;  %v697_v12 = vpop.permute.xlu1 %696 }
 0x1cd   :  { %1690 = vmatprep.mubr.msk.f32.mxu0 %vm709_vm2, %v2018_v17 }
 0x1d0   :  { %1691 = vmatmul.mubr.msk.f32.gmra.mrb[18].mxu0 %vm709_vm2, %v2023_v18  ;;  %v707_v3 = vpop.permute.xlu1 %706 }
 0x1d1   :  { %1739 = vmatprep.mubr.msk.f32.mxu0 %vm709_vm2, %v2035_v25 }
 0x1d4   :  { %v900_v16 = vpop.permute.xlu1 %899 }
 0x1d8   :  { %v910_v53 = vpop.permute.xlu1 %909 }
 0x1dc   :  { %v1201_v23 = vpop.permute.xlu1 %1200 }
 0x29f   :  { %v1689_v17 = vpop.f32.mrb[16].mxu0 }
 0x2a0   :  { %v790_v57 = vadd.f32 %v1689_v17, %v697_v12  ;;  %v784_v58 = vpop.f32.mrb[17].mxu0 }
 0x2a1   :  { %v785_v18 = vadd.f32 %v784_v58, %v692_v56 }
 0x2a2   :  { %v804_v59 = vmax.f32 %v790_v57, 0.0 }
 0x2a3   :  { %v803_v25 = vmax.f32 %v785_v18, 0.0  ;;  %v1692_v4 = vpop.f32.mrb[18].mxu0 }
 0x2a4   :  { %v800_v48 = vadd.f32 %v1692_v4, %v707_v3  ;;  %v794_v5 = vpop.f32.mrb[19].mxu0 }
 0x2a5   :  { %v1895_v11 = vpack.c.bf16 %v804_v59, %v803_v25  ;;  %v795_v49 = vadd.f32 %v794_v5, %v702_v35  ;;  %1725 = vmatprep.mubr.f32.mxu1 %v803_v25 }
 0x2a6   :  { %v806_v19 = vmax.f32 %v800_v48, 0.0  ;;  %1726 = vmatmul.mubr.f32.vlgmr.msra.gmra.mrb[16].mxu1 %v804_v59 }
 0x2a7   :  { %v805_v13 = vmax.f32 %v795_v49, 0.0  ;;  %1896 = vmatprep.subr.bf16.mxu1 %v1895_v11 }
 0x2a8   :  { %1898 = vmatpush3.bf16.msra.mxu1 %v1895_v11 }
 0x2a9   :  { %v1899_v45 = vpack.c.bf16 %v806_v19, %v805_v13  ;;  %1728 = vmatprep.mubr.f32.mxu1 %v805_v13 }
 0x2aa   :  { %1729 = vmatmul.mubr.f32.gmra.mrb[18].mxu1 %v806_v19 }
 0x2ab   :  { %1900 = vmatprep.subr.bf16.mxu1 %v1899_v45  ;;  %1753 = vmatprep.mubr.msk.f32.mxu1 %vm709_vm2, %v2102_v50 }
 0x2ac   :  { %1902 = vmatpush3.bf16.msra.mxu1 %v1899_v45 }
 0x2af   :  { %1754 = vmatmul.mubr.msk.f32.vlgmr.msra.gmra.mrb[20].mxu1 %vm709_vm2, %v2107_v51 }
 0x379   :  { %v1727_v39 = vpop.f32.mrb[16].mxu1 }
 0x37a   :  { %v873_v40 = vpop.f32.mrb[17].mxu1 }
 0x37b   :  { %v1871_v52 = vpack.c.bf16 %v1727_v39, %v873_v40 }
 0x37d   :  { %v1730_v63 = vpop.f32.mrb[18].mxu1  ;;  %1872 = vmatprep.subr.bf16.mxu0 %v1871_v52 }
 0x37e   :  { %v883_v9 = vpop.f32.mrb[19].mxu1  ;;  %1874 = vmatpush3.bf16.msra.mxu0 %v1871_v52 }
 0x37f   :  { %v1875_v10 = vpack.c.bf16 %v1730_v63, %v883_v9 }
 0x381   :  { %1876 = vmatprep.subr.bf16.mxu0 %v1875_v10 }
 0x382   :  { %1878 = vmatpush3.bf16.msra.mxu0 %v1875_v10  ;;  %v1755_v50 = vpop.f32.mrb[20].mxu1 }
 0x383   :  { %v1279_v34 = vadd.f32 %v1755_v50, %v1201_v23  ;;  %1880 = vmatprep.subr.bf16.mxu0 %v2382_v0  ;;  %v1273_v51 = vpop.f32.mrb[21].mxu1 }
 0x384   :  { %v1274_v36 = vadd.f32 %v1273_v51, %v1196_v24 }
 0x385   :  { %1293 = vrot.lane.b32.xlu1 %v1279_v34, %s1923_s1  ;;  %1740 = vmatmul.mubr.msk.f32.vlgmr.msra.gmra.mrb[20].mxu0 %vm709_vm2, %v2040_v26  ;;  %1285 = vst.msk [vmem:[%s2538_s6] sm:$0xf] %vm1284_vm14, %v1279_v34  ;;  %v1306_v26 = vpop.permute.xlu1 %1305 }
 0x386   :  { %1287 = vrot.lane.b32.xlu0 %v1274_v36, %s1923_s1  ;;  %1882 = vmatpush1.bf16.msra.mxu0 %v2378_v54  ;;  %1283 = vst.msk [vmem:[%s2539_s3] sm:$0xff] %vm1282_vm12, %v1274_v36 }
 0x387   :  { %1884 = vmatprep.subr.bf16.mxu0 %v2390_v46  ;;  %1742 = vmatprep.mubr.msk.f32.mxu0 %vm709_vm2, %v2071_v43  ;;  %v1301_v43 = vpop.permute.xlu0 %1300 }
 0x389   :  { %1743 = vmatmul.mubr.msk.f32.gmra.mrb[22].mxu0 %vm709_vm2, %v2076_v44  ;;  %v1012_v44 = vpop.permute.xlu1 %1011 }
 0x38a   :  { %1886 = vmatpush1.bf16.msra.mxu0 %v2386_v42  ;;  %1087 = vmatprep.mubr.f32.mxu0 %v1920_v2 }
 0x38b   :  { %1888 = vmatprep.subr.bf16.mxu0 %v2384_v1  ;;  %v1017_v54 = vpop.permute.xlu0 %1016 }
 0x38d   :  { %1528 = vmatmul.mubr.msk.f32.vlgmr.msra.gmra.mrb[24].mxu0 %vm709_vm2, %v2219_v8 }
 0x38e   :  { %1890 = vmatpush1.bf16.msra.mxu0 %v2380_v55  ;;  %1093 = vmatprep.mubr.f32.mxu0 %v1920_v2 }
 0x38f   :  { %1892 = vmatprep.subr.bf16.mxu0 %v2392_v47 }
 0x391   :  { %1529 = vmatmul.mubr.msk.f32.gmra.mrb[26].mxu0 %vm709_vm2, %v2214_v7 }
 0x392   :  { %1894 = vmatpush1.bf16.msra.mxu0 %v2388_v38  ;;  %1164 = vmatprep.mubr.f32.mxu0 %v1920_v2 }
 0x395   :  { %1530 = vmatmul.mubr.msk.f32.vlgmr.msra.gmra.mrb[28].mxu0 %vm709_vm2, %v2219_v8 }
 0x396   :  { %1170 = vmatprep.mubr.f32.mxu0 %v1920_v2 }
 0x399   :  { %1531 = vmatmul.mubr.msk.f32.gmra.mrb[30].mxu0 %vm709_vm2, %v2214_v7 }
 0x39a   :  { %1764 = vmatprep.mubr.msk.f32.mxu0 %vm709_vm2, %v2158_v60 }
 0x3f7   :  { %v1294_v55 = vpop.permute.xlu1 %1293 }
 0x3f8   :  { %1538 = vst.msk [vmem:[%s2538_s6 + $0x4] sm:$0xf] %vm1284_vm14, %v1294_v55  ;;  %v1288_v0 = vpop.permute.xlu0 %1287 }
 0x3f9   :  { %1537 = vst.msk [vmem:[%s2539_s3 + $0x8] sm:$0xff] %vm1282_vm12, %v1288_v0 }
 0x458   :  { %v1741_v2 = vpop.f32.mrb[20].mxu0 }
 0x459   :  { %v992_v7 = vadd.f32 %v1741_v2, %v900_v16  ;;  %v986_v8 = vpop.f32.mrb[21].mxu0 }
 0x45a   :  { %v987_v60 = vadd.f32 %v986_v8, %v895_v31 }
 0x45b   :  { %v1006_v1 = vmax.f32 %v992_v7, 0.0 }
 0x45c   :  { %v1005_v42 = vmax.f32 %v987_v60, 0.0  ;;  %v1744_v38 = vpop.f32.mrb[22].mxu0 }
 0x45d   :  { %v1002_v46 = vadd.f32 %v1744_v38, %v910_v53  ;;  %v996_v47 = vpop.f32.mrb[23].mxu0 }
 0x45e   :  { %v1903_v20 = vpack.c.bf16 %v1006_v1, %v1005_v42  ;;  %v997_v21 = vadd.f32 %v996_v47, %v905_v62 }
 0x45f   :  { %v1008_v22 = vmax.f32 %v1002_v46, 0.0 }
 0x460   :  { %v1007_v27 = vmax.f32 %v997_v21, 0.0  ;;  %v1089_v28 = vpop.f32.mrb[24].mxu0  ;;  %1904 = vmatprep.subr.bf16.mxu0 %v1903_v20 }
 0x461   :  { %v1090_v29 = vadd.f32 %v1089_v28, %v1012_v44  ;;  %v1091_v30 = vpop.f32.mrb[25].mxu0  ;;  %1906 = vmatpush3.bf16.msra.mxu0 %v1903_v20 }
 0x462   :  { %v1907_v14 = vpack.c.bf16 %v1008_v22, %v1007_v27  ;;  %v1092_v32 = vadd.f32 %v1091_v30, %v1012_v44 }
 0x463   :  { %1177 = vst [vmem:[%s2540_s2] sm:$0xff] %v1090_v29 }
 0x464   :  { %1178 = vst [vmem:[%s2540_s2 + $0x8] sm:$0xff] %v1092_v32  ;;  %v1095_v15 = vpop.f32.mrb[26].mxu0  ;;  %1908 = vmatprep.subr.bf16.mxu0 %v1907_v14 }
 0x465   :  { %v1096_v6 = vadd.f32 %v1095_v15, %v1017_v54  ;;  %v1097_v33 = vpop.f32.mrb[27].mxu0  ;;  %1910 = vmatpush3.bf16.msra.mxu0 %v1907_v14 }
 0x466   :  { %v1098_v41 = vadd.f32 %v1097_v33, %v1017_v54 }
 0x468   :  { %v1181_v37 = vcombine.low %v1096_v6, %v1098_v41  ;;  %v1166_v12 = vpop.f32.mrb[28].mxu0  ;;  %1765 = vmatmul.mubr.msk.f32.vlgmr.msra.gmra.mrb[32].mxu0 %vm709_vm2, %v2163_v61  ;;  %vm1389_vm2 = vcmask 125952  }
 0x469   :  { %v1167_v56 = vadd.f32 %v1166_v12, %v1012_v44  ;;  %v1168_v17 = vpop.f32.mrb[29].mxu0 }
 0x46a   :  { %1183 = vst [vmem:[%s2541_s5] sm:$0xff] %v1181_v37  ;;  %v1169_v57 = vadd.f32 %v1168_v17, %v1012_v44 }
 0x46b   :  { %1532 = vst [vmem:[%s2540_s2 + $0x10] sm:$0xff] %v1167_v56 }
 0x46c   :  { %1533 = vst [vmem:[%s2540_s2 + $0x18] sm:$0xff] %v1169_v57  ;;  %v1172_v58 = vpop.f32.mrb[30].mxu0 }
 0x46d   :  { %v1173_v18 = vadd.f32 %v1172_v58, %v1017_v54  ;;  %v1174_v59 = vpop.f32.mrb[31].mxu0 }
 0x46e   :  { %v1175_v3 = vadd.f32 %v1174_v59, %v1017_v54 }
 0x470   :  { %v1189_v61 = vcombine.low %v1173_v18, %v1175_v3 }
 0x472   :  { %1534 = vst [vmem:[%s2541_s5 + $0x8] sm:$0xff] %v1189_v61 }
 0x53b   :  { %v1766_v25 = vpop.f32.mrb[32].mxu0 }
 0x53c   :  { %v1384_v4 = vadd.f32 %v1766_v25, %v1306_v26  ;;  %v1378_v35 = vpop.f32.mrb[33].mxu0 }
 0x53d   :  { %v1379_v48 = vadd.f32 %v1378_v35, %v1301_v43 }
 0x53e   :  { %1398 = vrot.lane.b32.xlu1 %v1384_v4, %s1924_s10  ;;  %1390 = vst.msk [vmem:[%s2542_s7] sm:$0xf] %vm1389_vm2, %v1384_v4 }
 0x53f   :  { %1392 = vrot.lane.b32.xlu0 %v1379_v48, %s1924_s10  ;;  %1388 = vst.msk [vmem:[%s2543_s4] sm:$0xff] %vm1387_vm13, %v1379_v48 }
 0x5b0   :  { %v1399_v5 = vpop.permute.xlu1 %1398 }
 0x5b1   :  { %1542 = vst.msk [vmem:[%s2542_s7 + $0x4] sm:$0xf] %vm1389_vm2, %v1399_v5  ;;  %v1393_v11 = vpop.permute.xlu0 %1392 }
 0x5b2   :  { %1541 = vst.msk [vmem:[%s2543_s4 + $0x8] sm:$0xff] %vm1387_vm13, %v1393_v11 }

</bundles_post_ra>
